<compile_context>
chip_gen: v5e
topology: v5e:2x2
jax: 0.10.0
libtpu: 0.0.40
codegen_flags: <defaults>
</compile_context>

<pallas_src>
import jax
import jax.numpy as jnp
from jax import lax
from jax.experimental import pallas as pl
from jax.experimental.pallas import tpu as pltpu

# Problem sizes (small, deterministic, consistent with the module usage).
N, C_IN, H, W = 2, 4, 16, 16
C_MID, C_OUT = 8, 8
C_TOT = C_OUT + C_IN
KH = KW = 3
R = N * H                      # matmul rows (batch folded into M)


def skipblock_kernel(x_ref, B1_ref, B2_ref, bias1_ref, bias2_ref,
                     sprev_ref, snext_ref, o_ref):
    """Fused SkipBlock forward: [conv3x3->ReLU->conv3x3->ReLU | identity].

    x_ref    : (R, C_IN*W)  = (32, 64)   input rows, lanes = (ci, x)
    B1_ref   : (3, C_IN*W,  C_MID*W)     per-dy row-Toeplitz conv1 weights
    B2_ref   : (3, C_MID*W, C_OUT*W)     per-dy row-Toeplitz conv2 weights
    bias1_ref: (1, C_MID*W)              conv1 bias repeated over x
    bias2_ref: (1, C_OUT*W)              conv2 bias repeated over x
    sprev_ref: (R, R)  0/1 matrix selecting row (n, y-1) (0 at y == 0)
    snext_ref: (R, R)  0/1 matrix selecting row (n, y+1) (0 at y == H-1)
    o_ref    : (R, C_TOT*W) = (32, 192)  [main | skip] lane-concat output
    """
    sprev = sprev_ref[...]
    snext = snext_ref[...]
    x = x_ref[...]

    def conv3x3_rows(a, B_ref, bias):
        # a: (R, Cin*W); per-dy dot folds the dx loop and x-padding into B_dy.
        q0 = jnp.dot(a, B_ref[0], preferred_element_type=jnp.float32)
        q1 = jnp.dot(a, B_ref[1], preferred_element_type=jnp.float32)
        q2 = jnp.dot(a, B_ref[2], preferred_element_type=jnp.float32)
        # y-halo via per-image row-shift matrices (zero at image borders).
        out = (jnp.dot(sprev, q0, preferred_element_type=jnp.float32)
               + q1
               + jnp.dot(snext, q2, preferred_element_type=jnp.float32))
        return jnp.maximum(out + bias, 0.0)

    h1 = conv3x3_rows(x, B1_ref, bias1_ref[...])    # (32, 128)
    h2 = conv3x3_rows(h1, B2_ref, bias2_ref[...])   # (32, 128)

    # torch.cat([main(x), Identity()(x)], dim=1) == lane-axis concat here.
    o_ref[:, :C_OUT * W] = h2                       # main branch (lane-dense)
    o_ref[:, C_OUT * W:] = x                        # skip / identity branch


def conv_row_matrices(w, width):
    """HWIO weights (3,3,CI,CO) -> per-dy row-Toeplitz (3, CI*W, CO*W).

    B[dy, ci*W+x', co*W+x] = w[dy, x'-x+1, ci, co] if 0 <= x'-x+1 < 3 else 0
    (encodes both the dx sum and the SAME x-padding; lanes are (c, x) order).
    """
    kh, kw, ci, co = w.shape
    dx = jnp.arange(kw)[:, None, None]          # (3,1,1)
    xs = jnp.arange(width)[None, :, None]       # x' (1,W,1)
    xo = jnp.arange(width)[None, None, :]       # x  (1,1,W)
    sel = (xs == xo + dx - 1).astype(w.dtype)   # (3, W, W): sel[dx, x', x]
    B = jnp.einsum('dpx,kdio->kipox', sel, w)   # (3, CI, W, CO, W)
    return B.reshape(kh, ci * width, co * width)


def row_shift_matrices():
    """(R,R) 0/1 matrices selecting the previous / next row within an image."""
    r = jnp.arange(R)
    prev_ok = (r % H) != 0
    next_ok = (r % H) != (H - 1)
    s_prev = ((r[:, None] - r[None, :]) == 1) & prev_ok[:, None]
    s_next = ((r[None, :] - r[:, None]) == 1) & next_ok[:, None]
    return s_prev.astype(jnp.float32), s_next.astype(jnp.float32)


@jax.jit
def skip_block(x_nchw, w1, b1, w2, b2):
    """SkipBlock forward: cat([main(x), x], dim=1). NCHW in / NCHW out."""
    # Layout plumbing only: NCHW -> (N*H, C_IN*W) rows. No spatial padding.
    x_rows = jnp.transpose(x_nchw, (0, 2, 1, 3)).reshape(R, C_IN * W)

    B1 = conv_row_matrices(w1, W)                        # (3, 64, 128)
    B2 = conv_row_matrices(w2, W)                        # (3, 128, 128)
    bias1 = jnp.repeat(b1, W).reshape(1, C_MID * W)      # (1, 128)
    bias2 = jnp.repeat(b2, W).reshape(1, C_OUT * W)      # (1, 128)
    s_prev, s_next = row_shift_matrices()                # (32, 32) each

    out_rows = pl.pallas_call(
        skipblock_kernel,
        out_shape=jax.ShapeDtypeStruct((R, C_TOT * W), jnp.float32),
        grid=(1,),
        in_specs=[
            pl.BlockSpec((R, C_IN * W), lambda i: (0, 0)),
            pl.BlockSpec((KH, C_IN * W, C_MID * W), lambda i: (0, 0, 0)),
            pl.BlockSpec((KH, C_MID * W, C_OUT * W), lambda i: (0, 0, 0)),
            pl.BlockSpec((1, C_MID * W), lambda i: (0, 0)),
            pl.BlockSpec((1, C_OUT * W), lambda i: (0, 0)),
            pl.BlockSpec((R, R), lambda i: (0, 0)),
            pl.BlockSpec((R, R), lambda i: (0, 0)),
        ],
        out_specs=pl.BlockSpec((R, C_TOT * W), lambda i: (0, 0)),
        compiler_params=pltpu.CompilerParams(
            dimension_semantics=("arbitrary",)),
    )(x_rows, B1, B2, bias1, bias2, s_prev, s_next)

    # (R, C_TOT*W) rows with lanes (c, x)  ->  NCHW.
    return jnp.transpose(out_rows.reshape(N, H, C_TOT, W), (0, 2, 1, 3))


def ref_forward(x_nchw, w1, b1, w2, b2):
    """Pure-JAX reference (same math as the PyTorch SkipBlock)."""
    x = jnp.transpose(x_nchw, (0, 2, 3, 1))
    dn = ('NHWC', 'HWIO', 'NHWC')
    h = lax.conv_general_dilated(x, w1, (1, 1), 'SAME', dimension_numbers=dn)
    h = jnp.maximum(h + b1, 0.0)
    h = lax.conv_general_dilated(h, w2, (1, 1), 'SAME', dimension_numbers=dn)
    h = jnp.maximum(h + b2, 0.0)
    main_nchw = jnp.transpose(h, (0, 3, 1, 2))
    return jnp.concatenate([main_nchw, x_nchw], axis=1)


if __name__ == "__main__":
    key = jax.random.PRNGKey(0)
    kx, k1, kb1, k2, kb2 = jax.random.split(key, 5)

    # Deterministic synthetic parameters (HWIO; PyTorch OIHW would be permuted).
    x = jax.random.normal(kx, (N, C_IN, H, W), jnp.float32)
    w1 = jax.random.normal(k1, (KH, KW, C_IN, C_MID), jnp.float32) * 0.1
    b1 = jax.random.normal(kb1, (C_MID,), jnp.float32) * 0.1
    w2 = jax.random.normal(k2, (KH, KW, C_MID, C_OUT), jnp.float32) * 0.1
    b2 = jax.random.normal(kb2, (C_OUT,), jnp.float32) * 0.1

    out = jax.block_until_ready(skip_block(x, w1, b1, w2, b2))
    ref = jax.block_until_ready(ref_forward(x, w1, b1, w2, b2))

    assert out.shape == (N, C_TOT, H, W), out.shape
    assert jnp.allclose(out, ref, atol=1e-3, rtol=1e-3), \
        float(jnp.max(jnp.abs(out - ref)))
    print("KERNEL_OK")
</pallas_src>

<mosaic_0001>
module attributes {stable_mosaic.version = 11 : i64} {
  func.func @skipblock_kernel(%arg0: i32, %arg1: memref<32x64xf32, #tpu.memory_space<vmem>>, %arg2: memref<3x64x128xf32, #tpu.memory_space<vmem>>, %arg3: memref<3x128x128xf32, #tpu.memory_space<vmem>>, %arg4: memref<1x128xf32, #tpu.memory_space<vmem>>, %arg5: memref<1x128xf32, #tpu.memory_space<vmem>>, %arg6: memref<32x32xf32, #tpu.memory_space<vmem>>, %arg7: memref<32x32xf32, #tpu.memory_space<vmem>>, %arg8: memref<32x192xf32, #tpu.memory_space<vmem>>) attributes {dimension_semantics = [#tpu.dimension_semantics<arbitrary>], iteration_bounds = array<i64: 1>, scalar_prefetch = 0 : i64, scratch_operands = 0 : i64, tpu.core_type = #tpu.core_type<tc>, window_params = [{pipeline_mode = #tpu.pipeline_mode<synchronous>, transform_indices = @transform_0, window_bounds = array<i64: 32, 64>}, {pipeline_mode = #tpu.pipeline_mode<synchronous>, transform_indices = @transform_1, window_bounds = array<i64: 3, 64, 128>}, {pipeline_mode = #tpu.pipeline_mode<synchronous>, transform_indices = @transform_2, window_bounds = array<i64: 3, 128, 128>}, {pipeline_mode = #tpu.pipeline_mode<synchronous>, transform_indices = @transform_3, window_bounds = array<i64: 1, 128>}, {pipeline_mode = #tpu.pipeline_mode<synchronous>, transform_indices = @transform_4, window_bounds = array<i64: 1, 128>}, {pipeline_mode = #tpu.pipeline_mode<synchronous>, transform_indices = @transform_5, window_bounds = array<i64: 32, 32>}, {pipeline_mode = #tpu.pipeline_mode<synchronous>, transform_indices = @transform_6, window_bounds = array<i64: 32, 32>}, {pipeline_mode = #tpu.pipeline_mode<synchronous>, transform_indices = @transform_7, window_bounds = array<i64: 32, 192>}]} {
    %c0 = arith.constant 0 : index
    %c0_0 = arith.constant 0 : index
    %0 = vector.load %arg6[%c0, %c0_0] : memref<32x32xf32, #tpu.memory_space<vmem>>, vector<32x32xf32>
    %c0_1 = arith.constant 0 : index
    %c0_2 = arith.constant 0 : index
    %1 = vector.load %arg7[%c0_1, %c0_2] : memref<32x32xf32, #tpu.memory_space<vmem>>, vector<32x32xf32>
    %c0_3 = arith.constant 0 : index
    %c0_4 = arith.constant 0 : index
    %2 = vector.load %arg1[%c0_3, %c0_4] : memref<32x64xf32, #tpu.memory_space<vmem>>, vector<32x64xf32>
    %c0_5 = arith.constant 0 : index
    %c0_6 = arith.constant 0 : index
    %3 = vector.load %arg4[%c0_5, %c0_6] : memref<1x128xf32, #tpu.memory_space<vmem>>, vector<1x128xf32>
    %c0_7 = arith.constant 0 : index
    %c0_8 = arith.constant 0 : index
    %c0_9 = arith.constant 0 : index
    %4 = vector.load %arg2[%c0_7, %c0_8, %c0_9] : memref<3x64x128xf32, #tpu.memory_space<vmem>>, vector<1x64x128xf32>
    %5 = vector.shape_cast %4 : vector<1x64x128xf32> to vector<64x128xf32>
    %cst = arith.constant dense<0.000000e+00> : vector<32x128xf32>
    %6 = tpu.matmul %2, %5, %cst {dimension_numbers = #tpu.dot_dimension_numbers<[1], [0], [0], [1], [0, 0, 1, 1], [], []>} : vector<32x64xf32>, vector<64x128xf32>, vector<32x128xf32> -> vector<32x128xf32>
    %c1 = arith.constant 1 : index
    %c0_10 = arith.constant 0 : index
    %c0_11 = arith.constant 0 : index
    %7 = vector.load %arg2[%c1, %c0_10, %c0_11] : memref<3x64x128xf32, #tpu.memory_space<vmem>>, vector<1x64x128xf32>
    %8 = vector.shape_cast %7 : vector<1x64x128xf32> to vector<64x128xf32>
    %cst_12 = arith.constant dense<0.000000e+00> : vector<32x128xf32>
    %9 = tpu.matmul %2, %8, %cst_12 {dimension_numbers = #tpu.dot_dimension_numbers<[1], [0], [0], [1], [0, 0, 1, 1], [], []>} : vector<32x64xf32>, vector<64x128xf32>, vector<32x128xf32> -> vector<32x128xf32>
    %c2 = arith.constant 2 : index
    %c0_13 = arith.constant 0 : index
    %c0_14 = arith.constant 0 : index
    %10 = vector.load %arg2[%c2, %c0_13, %c0_14] : memref<3x64x128xf32, #tpu.memory_space<vmem>>, vector<1x64x128xf32>
    %11 = vector.shape_cast %10 : vector<1x64x128xf32> to vector<64x128xf32>
    %cst_15 = arith.constant dense<0.000000e+00> : vector<32x128xf32>
    %12 = tpu.matmul %2, %11, %cst_15 {dimension_numbers = #tpu.dot_dimension_numbers<[1], [0], [0], [1], [0, 0, 1, 1], [], []>} : vector<32x64xf32>, vector<64x128xf32>, vector<32x128xf32> -> vector<32x128xf32>
    %cst_16 = arith.constant dense<0.000000e+00> : vector<32x128xf32>
    %13 = tpu.matmul %0, %6, %cst_16 {dimension_numbers = #tpu.dot_dimension_numbers<[1], [0], [0], [1], [0, 0, 1, 1], [], []>} : vector<32x32xf32>, vector<32x128xf32>, vector<32x128xf32> -> vector<32x128xf32>
    %14 = arith.addf %13, %9 : vector<32x128xf32>
    %cst_17 = arith.constant dense<0.000000e+00> : vector<32x128xf32>
    %15 = tpu.matmul %1, %12, %cst_17 {dimension_numbers = #tpu.dot_dimension_numbers<[1], [0], [0], [1], [0, 0, 1, 1], [], []>} : vector<32x32xf32>, vector<32x128xf32>, vector<32x128xf32> -> vector<32x128xf32>
    %16 = arith.addf %14, %15 : vector<32x128xf32>
    %17 = vector.broadcast %3 : vector<1x128xf32> to vector<32x128xf32>
    %18 = arith.addf %16, %17 : vector<32x128xf32>
    %cst_18 = arith.constant 0.000000e+00 : f32
    %19 = vector.broadcast %cst_18 : f32 to vector<32x128xf32>
    %20 = arith.maximumf %18, %19 : vector<32x128xf32>
    %c0_19 = arith.constant 0 : index
    %c0_20 = arith.constant 0 : index
    %21 = vector.load %arg5[%c0_19, %c0_20] : memref<1x128xf32, #tpu.memory_space<vmem>>, vector<1x128xf32>
    %c0_21 = arith.constant 0 : index
    %c0_22 = arith.constant 0 : index
    %c0_23 = arith.constant 0 : index
    %22 = vector.load %arg3[%c0_21, %c0_22, %c0_23] : memref<3x128x128xf32, #tpu.memory_space<vmem>>, vector<1x128x128xf32>
    %23 = vector.shape_cast %22 : vector<1x128x128xf32> to vector<128x128xf32>
    %cst_24 = arith.constant dense<0.000000e+00> : vector<32x128xf32>
    %24 = tpu.matmul %20, %23, %cst_24 {dimension_numbers = #tpu.dot_dimension_numbers<[1], [0], [0], [1], [0, 0, 1, 1], [], []>} : vector<32x128xf32>, vector<128x128xf32>, vector<32x128xf32> -> vector<32x128xf32>
    %c1_25 = arith.constant 1 : index
    %c0_26 = arith.constant 0 : index
    %c0_27 = arith.constant 0 : index
    %25 = vector.load %arg3[%c1_25, %c0_26, %c0_27] : memref<3x128x128xf32, #tpu.memory_space<vmem>>, vector<1x128x128xf32>
    %26 = vector.shape_cast %25 : vector<1x128x128xf32> to vector<128x128xf32>
    %cst_28 = arith.constant dense<0.000000e+00> : vector<32x128xf32>
    %27 = tpu.matmul %20, %26, %cst_28 {dimension_numbers = #tpu.dot_dimension_numbers<[1], [0], [0], [1], [0, 0, 1, 1], [], []>} : vector<32x128xf32>, vector<128x128xf32>, vector<32x128xf32> -> vector<32x128xf32>
    %c2_29 = arith.constant 2 : index
    %c0_30 = arith.constant 0 : index
    %c0_31 = arith.constant 0 : index
    %28 = vector.load %arg3[%c2_29, %c0_30, %c0_31] : memref<3x128x128xf32, #tpu.memory_space<vmem>>, vector<1x128x128xf32>
    %29 = vector.shape_cast %28 : vector<1x128x128xf32> to vector<128x128xf32>
    %cst_32 = arith.constant dense<0.000000e+00> : vector<32x128xf32>
    %30 = tpu.matmul %20, %29, %cst_32 {dimension_numbers = #tpu.dot_dimension_numbers<[1], [0], [0], [1], [0, 0, 1, 1], [], []>} : vector<32x128xf32>, vector<128x128xf32>, vector<32x128xf32> -> vector<32x128xf32>
    %cst_33 = arith.constant dense<0.000000e+00> : vector<32x128xf32>
    %31 = tpu.matmul %0, %24, %cst_33 {dimension_numbers = #tpu.dot_dimension_numbers<[1], [0], [0], [1], [0, 0, 1, 1], [], []>} : vector<32x32xf32>, vector<32x128xf32>, vector<32x128xf32> -> vector<32x128xf32>
    %32 = arith.addf %31, %27 : vector<32x128xf32>
    %cst_34 = arith.constant dense<0.000000e+00> : vector<32x128xf32>
    %33 = tpu.matmul %1, %30, %cst_34 {dimension_numbers = #tpu.dot_dimension_numbers<[1], [0], [0], [1], [0, 0, 1, 1], [], []>} : vector<32x32xf32>, vector<32x128xf32>, vector<32x128xf32> -> vector<32x128xf32>
    %34 = arith.addf %32, %33 : vector<32x128xf32>
    %35 = vector.broadcast %21 : vector<1x128xf32> to vector<32x128xf32>
    %36 = arith.addf %34, %35 : vector<32x128xf32>
    %cst_35 = arith.constant 0.000000e+00 : f32
    %37 = vector.broadcast %cst_35 : f32 to vector<32x128xf32>
    %38 = arith.maximumf %36, %37 : vector<32x128xf32>
    %c0_36 = arith.constant 0 : index
    %c0_37 = arith.constant 0 : index
    %39 = vector.load %arg8[%c0_36, %c0_37] : memref<32x192xf32, #tpu.memory_space<vmem>>, vector<32x128xf32>
    tpu.vector_store %arg8[%c0_36, %c0_37], %38 {strides = array<i32>} : memref<32x192xf32, #tpu.memory_space<vmem>>, vector<32x128xf32>,
    %c0_38 = arith.constant 0 : index
    %c128 = arith.constant 128 : index
    %40 = vector.load %arg8[%c0_38, %c128] : memref<32x192xf32, #tpu.memory_space<vmem>>, vector<32x64xf32>
    tpu.vector_store %arg8[%c0_38, %c128], %2 {strides = array<i32>} : memref<32x192xf32, #tpu.memory_space<vmem>>, vector<32x64xf32>,
    return
  }
  func.func @transform_0(%arg0: i32) -> (i32, i32) {
    %c0_i32 = arith.constant 0 : i32
    %c0_i32_0 = arith.constant 0 : i32
    %c0_i32_1 = arith.constant 0 : i32
    return %c0_i32, %c0_i32_0 : i32, i32
  }
  func.func @transform_1(%arg0: i32) -> (i32, i32, i32) {
    %c0_i32 = arith.constant 0 : i32
    %c0_i32_0 = arith.constant 0 : i32
    %c0_i32_1 = arith.constant 0 : i32
    %c0_i32_2 = arith.constant 0 : i32
    return %c0_i32, %c0_i32_0, %c0_i32_1 : i32, i32, i32
  }
  func.func @transform_2(%arg0: i32) -> (i32, i32, i32) {
    %c0_i32 = arith.constant 0 : i32
    %c0_i32_0 = arith.constant 0 : i32
    %c0_i32_1 = arith.constant 0 : i32
    %c0_i32_2 = arith.constant 0 : i32
    return %c0_i32, %c0_i32_0, %c0_i32_1 : i32, i32, i32
  }
  func.func @transform_3(%arg0: i32) -> (i32, i32) {
    %c0_i32 = arith.constant 0 : i32
    %c0_i32_0 = arith.constant 0 : i32
    %c0_i32_1 = arith.constant 0 : i32
    return %c0_i32, %c0_i32_0 : i32, i32
  }
  func.func @transform_4(%arg0: i32) -> (i32, i32) {
    %c0_i32 = arith.constant 0 : i32
    %c0_i32_0 = arith.constant 0 : i32
    %c0_i32_1 = arith.constant 0 : i32
    return %c0_i32, %c0_i32_0 : i32, i32
  }
  func.func @transform_5(%arg0: i32) -> (i32, i32) {
    %c0_i32 = arith.constant 0 : i32
    %c0_i32_0 = arith.constant 0 : i32
    %c0_i32_1 = arith.constant 0 : i32
    return %c0_i32, %c0_i32_0 : i32, i32
  }
  func.func @transform_6(%arg0: i32) -> (i32, i32) {
    %c0_i32 = arith.constant 0 : i32
    %c0_i32_0 = arith.constant 0 : i32
    %c0_i32_1 = arith.constant 0 : i32
    return %c0_i32, %c0_i32_0 : i32, i32
  }
  func.func @transform_7(%arg0: i32) -> (i32, i32) {
    %c0_i32 = arith.constant 0 : i32
    %c0_i32_0 = arith.constant 0 : i32
    %c0_i32_1 = arith.constant 0 : i32
    return %c0_i32, %c0_i32_0 : i32, i32
  }
}

</mosaic_0001>

<bundles_post_ra>
// kernel: skip_block.1
= control target key start
LH: loop header
LB: loop body
LE: loop exit
PB: predicated region body
PF: predicated region fallthrough
CT: control target
= control target key end

     0   :  { %vm47_vm0 = vcmask 523264   ;;  %vm165_vm1 = vcmask 261120   ;;  %s958_s1 = inlined_call_operand.vmem [shape: f32[3,64,128], index: 1, kind: input, shape index: {}]   ;;  %s959_s0 = inlined_call_operand.vmem [shape: f32[32,64], index: 0, kind: input, shape index: {}]   ;;  %s960_s7 = inlined_call_operand.vmem [shape: f32[32,192], index: 7, kind: output, shape index: {}]   ;;  %s961_s5 = inlined_call_operand.vmem [shape: f32[32,32], index: 5, kind: input, shape index: {}]   ;;  %s962_s6 = inlined_call_operand.vmem [shape: f32[32,32], index: 6, kind: input, shape index: {}]   ;;  %s963_s3 = inlined_call_operand.vmem [shape: f32[1,128], index: 3, kind: input, shape index: {}]   ;;  %s964_s2 = inlined_call_operand.vmem [shape: f32[3,128,128], index: 2, kind: input, shape index: {}]   ;;  %s965_s4 = inlined_call_operand.vmem [shape: f32[1,128], index: 4, kind: input, shape index: {}]  }
   0x1   :  { %v46_v0 = vld [vmem:[%s958_s1 + $0x38] sm:$0xff]  ;;  %v45_v2 = vld [vmem:[%s958_s1 + $0x30] sm:$0xff]  ;;  %v44_v4 = vld [vmem:[%s958_s1 + $0x28] sm:$0xff] }
   0x2   :  { %v509_v1 = vld [vmem:[%s958_s1 + $0xb8] sm:$0xff]  ;;  %68 = vmatpush.msra.mxu0 %v46_v0  ;;  %v508_v3 = vld [vmem:[%s958_s1 + $0xb0] sm:$0xff]  ;;  %v507_v5 = vld [vmem:[%s958_s1 + $0xa8] sm:$0xff] }
   0x3   :  { %144 = vmatpush.msra.mxu2 %v509_v1  ;;  %v43_v6 = vld [vmem:[%s958_s1 + $0x20] sm:$0xff]  ;;  %v42_v9 = vld [vmem:[%s958_s1 + $0x18] sm:$0xff]  ;;  %v35_v11 = vld [vmem:[%s959_s0 + $0x8] sm:$0xff] }
   0x4   :  { %69 = vmatpush.msra.mxu0 %v45_v2  ;;  %v506_v7 = vld [vmem:[%s958_s1 + $0xa0] sm:$0xff]  ;;  %v505_v10 = vld [vmem:[%s958_s1 + $0x98] sm:$0xff]  ;;  %479 = vst.msk [vmem:[%s960_s7 + $0x18] sm:$0xff] %vm47_vm0, %v35_v11  ;;  %v36_v12 = vld [vmem:[%s959_s0 + $0x10] sm:$0xff] }
   0x5   :  { %145 = vmatpush.msra.mxu2 %v508_v3  ;;  %v34_v8 = vld [vmem:[%s959_s0] sm:$0xff]  ;;  %v41_v13 = vld [vmem:[%s958_s1 + $0x10] sm:$0xff]  ;;  %480 = vst.msk [vmem:[%s960_s7 + $0x28] sm:$0xff] %vm47_vm0, %v36_v12  ;;  %v37_v15 = vld [vmem:[%s959_s0 + $0x18] sm:$0xff] }
   0x6   :  { %70 = vmatpush.msra.mxu0 %v44_v4  ;;  %478 = vst.msk [vmem:[%s960_s7 + $0x8] sm:$0xff] %vm47_vm0, %v34_v8  ;;  %v504_v14 = vld [vmem:[%s958_s1 + $0x90] sm:$0xff]  ;;  %v40_v16 = vld [vmem:[%s958_s1 + $0x8] sm:$0xff]  ;;  %v39_v18 = vld [vmem:[%s958_s1] sm:$0xff] }
   0x7   :  { %146 = vmatpush.msra.mxu2 %v507_v5  ;;  %481 = vst.msk [vmem:[%s960_s7 + $0x38] sm:$0xff] %vm47_vm0, %v37_v15  ;;  %v503_v17 = vld [vmem:[%s958_s1 + $0x88] sm:$0xff]  ;;  %v502_v19 = vld [vmem:[%s958_s1 + $0x80] sm:$0xff]  ;;  %v497_v20 = vld [vmem:[%s958_s1 + $0x78] sm:$0xff] }
   0x8   :  { %71 = vmatpush.msra.mxu0 %v43_v6  ;;  %106 = vmatpush.msra.mxu1 %v497_v20  ;;  %v496_v21 = vld [vmem:[%s958_s1 + $0x70] sm:$0xff]  ;;  %v495_v22 = vld [vmem:[%s958_s1 + $0x68] sm:$0xff]  ;;  %v494_v23 = vld [vmem:[%s958_s1 + $0x60] sm:$0xff] }
   0x9   :  { %147 = vmatpush.msra.mxu2 %v506_v7  ;;  %v493_v24 = vld [vmem:[%s958_s1 + $0x58] sm:$0xff]  ;;  %v492_v26 = vld [vmem:[%s958_s1 + $0x50] sm:$0xff]  ;;  %v491_v27 = vld [vmem:[%s958_s1 + $0x48] sm:$0xff] }
   0xa   :  { %72 = vmatpush.msra.mxu0 %v42_v9  ;;  %107 = vmatpush.msra.mxu1 %v496_v21  ;;  %v490_v28 = vld [vmem:[%s958_s1 + $0x40] sm:$0xff]  ;;  %v734_v37 = vld [vmem:[%s961_s5 + $0x8] sm:$0xff]  ;;  %v741_v38 = vld [vmem:[%s961_s5 + $0x10] sm:$0xff] }
   0xb   :  { %148 = vmatpush.msra.mxu2 %v505_v10  ;;  %v726_v35 = vld [vmem:[%s961_s5] sm:$0xff]  ;;  %v748_v39 = vld [vmem:[%s961_s5 + $0x18] sm:$0xff]  ;;  %v762_v41 = vld [vmem:[%s962_s6 + $0x8] sm:$0xff] }
   0xc   :  { %73 = vmatpush.msra.mxu0 %v41_v13  ;;  %108 = vmatpush.msra.mxu1 %v495_v22  ;;  %v755_v40 = vld [vmem:[%s962_s6] sm:$0xff]  ;;  %v769_v42 = vld [vmem:[%s962_s6 + $0x10] sm:$0xff]  ;;  %v776_v43 = vld [vmem:[%s962_s6 + $0x18] sm:$0xff] }
   0xd   :  { %149 = vmatpush.msra.mxu2 %v504_v14  ;;  %v279_v44 = vld [vmem:[%s964_s2 + $0x78] sm:$0xff]  ;;  %v278_v47 = vld [vmem:[%s964_s2 + $0x70] sm:$0xff]  ;;  %v277_v50 = vld [vmem:[%s964_s2 + $0x68] sm:$0xff] }
   0xe   :  { %74 = vmatpush.msra.mxu0 %v40_v16  ;;  %109 = vmatpush.msra.mxu1 %v494_v23  ;;  %v537_v45 = vld [vmem:[%s964_s2 + $0xf8] sm:$0xff]  ;;  %v536_v48 = vld [vmem:[%s964_s2 + $0xf0] sm:$0xff]  ;;  %v535_v51 = vld [vmem:[%s964_s2 + $0xe8] sm:$0xff] }
   0xf   :  { %150 = vmatpush.msra.mxu2 %v503_v17  ;;  %v553_v46 = vld [vmem:[%s964_s2 + $0x178] sm:$0xff]  ;;  %v552_v49 = vld [vmem:[%s964_s2 + $0x170] sm:$0xff]  ;;  %v551_v52 = vld [vmem:[%s964_s2 + $0x168] sm:$0xff] }
  0x10   :  { %75 = vmatpush.msra.mxu0 %v39_v18  ;;  %110 = vmatpush.msra.mxu1 %v493_v24  ;;  %v276_v53 = vld [vmem:[%s964_s2 + $0x60] sm:$0xff]  ;;  %v275_v56 = vld [vmem:[%s964_s2 + $0x58] sm:$0xff]  ;;  %v274_v59 = vld [vmem:[%s964_s2 + $0x50] sm:$0xff] }
  0x11   :  { %151 = vmatpush.msra.mxu2 %v502_v19  ;;  %486 = vmatmul.msk.f32.vlgmr.msra.gmra.mxu0 %vm47_vm0, %v34_v8  ;;  %v534_v54 = vld [vmem:[%s964_s2 + $0xe0] sm:$0xff]  ;;  %v533_v57 = vld [vmem:[%s964_s2 + $0xd8] sm:$0xff]  ;;  %v532_v60 = vld [vmem:[%s964_s2 + $0xd0] sm:$0xff] }
  0x12   :  { %510 = vmatmul.msk.f32.vlgmr.msra.gmra.mxu2 %vm47_vm0, %v34_v8  ;;  %111 = vmatpush.msra.mxu1 %v492_v26  ;;  %v550_v55 = vld [vmem:[%s964_s2 + $0x160] sm:$0xff]  ;;  %v549_v58 = vld [vmem:[%s964_s2 + $0x158] sm:$0xff]  ;;  %v548_v61 = vld [vmem:[%s964_s2 + $0x150] sm:$0xff] }
  0x13   :  { %280 = vmatpush.msrb.mxu0 %v279_v44  ;;  %372 = vmatpush.msrb.mxu2 %v553_v46  ;;  %v273_v62 = vld [vmem:[%s964_s2 + $0x48] sm:$0xff]  ;;  %v272_v1 = vld [vmem:[%s964_s2 + $0x40] sm:$0xff]  ;;  %v271_v4 = vld [vmem:[%s964_s2 + $0x38] sm:$0xff] }
  0x14   :  { %112 = vmatpush.msra.mxu1 %v491_v27  ;;  %v531_v63 = vld [vmem:[%s964_s2 + $0xc8] sm:$0xff]  ;;  %v530_v2 = vld [vmem:[%s964_s2 + $0xc0] sm:$0xff]  ;;  %v529_v5 = vld [vmem:[%s964_s2 + $0xb8] sm:$0xff] }
  0x15   :  { %281 = vmatpush.msrb.mxu0 %v278_v47  ;;  %373 = vmatpush.msrb.mxu2 %v552_v49  ;;  %v547_v0 = vld [vmem:[%s964_s2 + $0x148] sm:$0xff]  ;;  %v546_v3 = vld [vmem:[%s964_s2 + $0x140] sm:$0xff]  ;;  %v545_v6 = vld [vmem:[%s964_s2 + $0x138] sm:$0xff] }
  0x16   :  { %113 = vmatpush.msra.mxu1 %v490_v28  ;;  %v270_v7 = vld [vmem:[%s964_s2 + $0x30] sm:$0xff]  ;;  %v269_v10 = vld [vmem:[%s964_s2 + $0x28] sm:$0xff]  ;;  %v268_v13 = vld [vmem:[%s964_s2 + $0x20] sm:$0xff] }
  0x17   :  { %498 = vmatmul.msk.f32.vlgmr.msra.gmra.mxu1 %vm47_vm0, %v34_v8  ;;  %282 = vmatpush.msrb.mxu0 %v277_v50  ;;  %v528_v8 = vld [vmem:[%s964_s2 + $0xb0] sm:$0xff]  ;;  %v526_v14 = vld [vmem:[%s964_s2 + $0xa0] sm:$0xff]  ;;  %v267_v17 = vld [vmem:[%s964_s2 + $0x18] sm:$0xff] }
  0x18   :  { %326 = vmatpush.msrb.mxu1 %v537_v45  ;;  %374 = vmatpush.msrb.mxu2 %v551_v52  ;;  %v544_v9 = vld [vmem:[%s964_s2 + $0x130] sm:$0xff]  ;;  %v525_v18 = vld [vmem:[%s964_s2 + $0x98] sm:$0xff]  ;;  %v265_v23 = vld [vmem:[%s964_s2 + $0x8] sm:$0xff] }
  0x19   :  { %487 = vmatmul.msk.f32.gmra.mxu0 %vm47_vm0, %v35_v11  ;;  %v541_v19 = vld [vmem:[%s964_s2 + $0x118] sm:$0xff]  ;;  %v266_v20 = vld [vmem:[%s964_s2 + $0x10] sm:$0xff]  ;;  %v523_v24 = vld [vmem:[%s964_s2 + $0x88] sm:$0xff] }
  0x1a   :  { %511 = vmatmul.msk.f32.gmra.mxu2 %vm47_vm0, %v35_v11  ;;  %327 = vmatpush.msrb.mxu1 %v536_v48  ;;  %v524_v21 = vld [vmem:[%s964_s2 + $0x90] sm:$0xff]  ;;  %v264_v26 = vld [vmem:[%s964_s2] sm:$0xff] }
  0x1b   :  { %283 = vmatpush.msrb.mxu0 %v276_v53  ;;  %375 = vmatpush.msrb.mxu2 %v550_v55  ;;  %v540_v22 = vld [vmem:[%s964_s2 + $0x110] sm:$0xff]  ;;  %v522_v27 = vld [vmem:[%s964_s2 + $0x80] sm:$0xff] }
  0x1c   :  { %328 = vmatpush.msrb.mxu1 %v535_v51  ;;  %v538_v28 = vld [vmem:[%s964_s2 + $0x100] sm:$0xff] }
  0x1d   :  { %284 = vmatpush.msrb.mxu0 %v275_v56  ;;  %376 = vmatpush.msrb.mxu2 %v549_v58 }
  0x1e   :  { %329 = vmatpush.msrb.mxu1 %v534_v54 }
  0x1f   :  { %499 = vmatmul.msk.f32.gmra.mxu1 %vm47_vm0, %v35_v11  ;;  %285 = vmatpush.msrb.mxu0 %v274_v59  ;;  %v527_v11 = vld [vmem:[%s964_s2 + $0xa8] sm:$0xff] }
  0x20   :  { %330 = vmatpush.msrb.mxu1 %v533_v57  ;;  %377 = vmatpush.msrb.mxu2 %v548_v61 }
  0x21   :  { %488 = vmatmul.msk.f32.gmra.mxu0 %vm47_vm0, %v36_v12 }
  0x22   :  { %512 = vmatmul.msk.f32.gmra.mxu2 %vm47_vm0, %v36_v12  ;;  %331 = vmatpush.msrb.mxu1 %v532_v60 }
  0x23   :  { %286 = vmatpush.msrb.mxu0 %v273_v62  ;;  %378 = vmatpush.msrb.mxu2 %v547_v0 }
  0x24   :  { %332 = vmatpush.msrb.mxu1 %v531_v63 }
  0x25   :  { %287 = vmatpush.msrb.mxu0 %v272_v1  ;;  %379 = vmatpush.msrb.mxu2 %v546_v3 }
  0x26   :  { %333 = vmatpush.msrb.mxu1 %v530_v2 }
  0x27   :  { %500 = vmatmul.msk.f32.gmra.mxu1 %vm47_vm0, %v36_v12  ;;  %288 = vmatpush.msrb.mxu0 %v271_v4  ;;  %v543_v12 = vld [vmem:[%s964_s2 + $0x128] sm:$0xff] }
  0x28   :  { %334 = vmatpush.msrb.mxu1 %v529_v5  ;;  %380 = vmatpush.msrb.mxu2 %v545_v6 }
  0x29   :  { %489 = vmatmul.msk.f32.gmra.mxu0 %vm47_vm0, %v37_v15 }
  0x2a   :  { %513 = vmatmul.msk.f32.gmra.mxu2 %vm47_vm0, %v37_v15  ;;  %289 = vmatpush.msrb.mxu0 %v270_v7 }
  0x2b   :  { %335 = vmatpush.msrb.mxu1 %v528_v8  ;;  %381 = vmatpush.msrb.mxu2 %v544_v9 }
  0x2c   :  { %290 = vmatpush.msrb.mxu0 %v269_v10 }
  0x2d   :  { %336 = vmatpush.msrb.mxu1 %v527_v11  ;;  %382 = vmatpush.msrb.mxu2 %v543_v12 }
  0x2e   :  { %291 = vmatpush.msrb.mxu0 %v268_v13 }
  0x2f   :  { %501 = vmatmul.msk.f32.gmra.mxu1 %vm47_vm0, %v37_v15  ;;  %v542_v15 = vld [vmem:[%s964_s2 + $0x120] sm:$0xff] }
  0x30   :  { %337 = vmatpush.msrb.mxu1 %v526_v14  ;;  %383 = vmatpush.msrb.mxu2 %v542_v15 }
  0x31   :  { %292 = vmatpush.msrb.mxu0 %v267_v17 }
  0x32   :  { %338 = vmatpush.msrb.mxu1 %v525_v18  ;;  %384 = vmatpush.msrb.mxu2 %v541_v19 }
  0x33   :  { %293 = vmatpush.msrb.mxu0 %v266_v20 }
  0x34   :  { %339 = vmatpush.msrb.mxu1 %v524_v21  ;;  %385 = vmatpush.msrb.mxu2 %v540_v22 }
  0x35   :  { %294 = vmatpush.msrb.mxu0 %v265_v23 }
  0x36   :  { %340 = vmatpush.msrb.mxu1 %v523_v24 }
  0x37   :  { %295 = vmatpush.msrb.mxu0 %v264_v26 }
  0x38   :  { %341 = vmatpush.msrb.mxu1 %v522_v27 }
  0x8e   :  { %v77_v25 = vpop.f32.mrf.mxu0 }
  0x95   :  { %v153_v29 = vpop.f32.mrf.mxu2 }
  0x96   :  { %v80_v30 = vpop.f32.mrf.mxu0 }
  0x9d   :  { %v156_v31 = vpop.f32.mrf.mxu2 }
  0x9e   :  { %v83_v32 = vpop.f32.mrf.mxu0 }
  0xa5   :  { %v159_v33 = vpop.f32.mrf.mxu2 }
  0xa6   :  { %v86_v34 = vpop.f32.mrf.mxu0 }
  0xa7   :  { %190 = vmatpush.msra.mxu3 %v86_v34  ;;  %v570_v34 = vld [vmem:[%s963_s3] ss:$0 sm:$0xff] }
  0xa9   :  { %191 = vmatpush.msra.mxu3 %v83_v32 }
  0xab   :  { %192 = vmatpush.msra.mxu3 %v80_v30 }
  0xad   :  { %v162_v36 = vpop.f32.mrf.mxu2  ;;  %193 = vmatpush.msra.mxu3 %v77_v25  ;;  %v539_v25 = vld [vmem:[%s964_s2 + $0x108] sm:$0xff] }
  0xae   :  { %514 = vmatmul.msk.f32.vlgmr.msra.gmra.mxu3 %vm165_vm1, %v726_v35  ;;  %386 = vmatpush.msrb.mxu2 %v539_v25 }
  0xaf   :  { %231 = vmatpush.msrb.mxu3 %v162_v36 }
  0xb0   :  { %387 = vmatpush.msrb.mxu2 %v538_v28 }
  0xb1   :  { %232 = vmatpush.msrb.mxu3 %v159_v33 }
  0xb3   :  { %233 = vmatpush.msrb.mxu3 %v156_v31  ;;  %v115_v31 = vpop.f32.mrf.mxu1 }
  0xb5   :  { %234 = vmatpush.msrb.mxu3 %v153_v29 }
  0xb6   :  { %515 = vmatmul.msk.f32.gmra.mxu3 %vm165_vm1, %v734_v37 }
  0xbb   :  { %v118_v36 = vpop.f32.mrf.mxu1 }
  0xbe   :  { %516 = vmatmul.msk.f32.gmra.mxu3 %vm165_vm1, %v741_v38 }
  0xc3   :  { %v121_v51 = vpop.f32.mrf.mxu1 }
  0xc6   :  { %517 = vmatmul.msk.f32.gmra.mxu3 %vm165_vm1, %v748_v39 }
  0xcb   :  { %v124_v58 = vpop.f32.mrf.mxu1 }
  0xce   :  { %518 = vmatmul.msk.f32.vlgmr.msrb.gmra.mxu3 %vm165_vm1, %v755_v40 }
  0xd6   :  { %519 = vmatmul.msk.f32.gmra.mxu3 %vm165_vm1, %v762_v41 }
  0xde   :  { %520 = vmatmul.msk.f32.gmra.mxu3 %vm165_vm1, %v769_v42 }
  0xe6   :  { %521 = vmatmul.msk.f32.gmra.mxu3 %vm165_vm1, %v776_v43 }
 0x131   :  { %v195_v16 = vpop.f32.mrf.mxu3 }
 0x132   :  { %v196_v33 = vadd.f32 %v195_v16, %v115_v31 }
 0x139   :  { %v198_v29 = vpop.f32.mrf.mxu3 }
 0x13a   :  { %v199_v48 = vadd.f32 %v198_v29, %v118_v36 }
 0x141   :  { %v201_v30 = vpop.f32.mrf.mxu3 }
 0x142   :  { %v202_v54 = vadd.f32 %v201_v30, %v121_v51 }
 0x149   :  { %v204_v32 = vpop.f32.mrf.mxu3 }
 0x14a   :  { %v205_v60 = vadd.f32 %v204_v32, %v124_v58 }
 0x151   :  { %v236_v44 = vpop.f32.mrf.mxu3 }
 0x152   :  { %v248_v45 = vadd.f32 %v236_v44, %v196_v33 }
 0x154   :  { %v255_v46 = vadd.f32 %v570_v34, %v248_v45 }
 0x156   :  { %v259_v47 = vmax.f32 %v255_v46, 0.0 }
 0x158   :  { %296 = vmatmul.f32.vlgmr.msrb.gmra.mxu0 %v259_v47  ;;  %342 = vmatmul.f32.vlgmr.msrb.gmra.mxu1 %v259_v47 }
 0x159   :  { %388 = vmatmul.f32.vlgmr.msrb.gmra.mxu2 %v259_v47  ;;  %v239_v49 = vpop.f32.mrf.mxu3 }
 0x15a   :  { %v249_v50 = vadd.f32 %v239_v49, %v199_v48 }
 0x15c   :  { %v256_v52 = vadd.f32 %v570_v34, %v249_v50 }
 0x15e   :  { %v260_v53 = vmax.f32 %v256_v52, 0.0 }
 0x160   :  { %299 = vmatmul.f32.gmra.mxu0 %v260_v53  ;;  %345 = vmatmul.f32.gmra.mxu1 %v260_v53 }
 0x161   :  { %391 = vmatmul.f32.gmra.mxu2 %v260_v53  ;;  %v242_v55 = vpop.f32.mrf.mxu3 }
 0x162   :  { %v250_v56 = vadd.f32 %v242_v55, %v202_v54 }
 0x164   :  { %v257_v57 = vadd.f32 %v570_v34, %v250_v56 }
 0x166   :  { %v261_v59 = vmax.f32 %v257_v57, 0.0 }
 0x168   :  { %302 = vmatmul.f32.gmra.mxu0 %v261_v59  ;;  %348 = vmatmul.f32.gmra.mxu1 %v261_v59 }
 0x169   :  { %394 = vmatmul.f32.gmra.mxu2 %v261_v59  ;;  %v245_v61 = vpop.f32.mrf.mxu3 }
 0x16a   :  { %v251_v62 = vadd.f32 %v245_v61, %v205_v60 }
 0x16c   :  { %v258_v63 = vadd.f32 %v570_v34, %v251_v62 }
 0x16e   :  { %v262_v0 = vmax.f32 %v258_v63, 0.0 }
 0x170   :  { %305 = vmatmul.f32.gmra.mxu0 %v262_v0  ;;  %351 = vmatmul.f32.gmra.mxu1 %v262_v0 }
 0x171   :  { %397 = vmatmul.f32.gmra.mxu2 %v262_v0 }
 0x1d5   :  { %v297_v1 = vpop.f32.mrf.mxu0 }
 0x1dc   :  { %v389_v2 = vpop.f32.mrf.mxu2 }
 0x1dd   :  { %v300_v3 = vpop.f32.mrf.mxu0 }
 0x1e4   :  { %v392_v4 = vpop.f32.mrf.mxu2 }
 0x1e5   :  { %v303_v5 = vpop.f32.mrf.mxu0 }
 0x1ec   :  { %v395_v6 = vpop.f32.mrf.mxu2 }
 0x1ed   :  { %v306_v7 = vpop.f32.mrf.mxu0 }
 0x1ee   :  { %413 = vmatpush.msra.mxu2 %v306_v7  ;;  %562 = vmatpush.msra.mxu3 %v306_v7 }
 0x1f0   :  { %414 = vmatpush.msra.mxu2 %v303_v5  ;;  %563 = vmatpush.msra.mxu3 %v303_v5 }
 0x1f2   :  { %415 = vmatpush.msra.mxu2 %v300_v3  ;;  %564 = vmatpush.msra.mxu3 %v300_v3 }
 0x1f4   :  { %v398_v8 = vpop.f32.mrf.mxu2  ;;  %416 = vmatpush.msra.mxu2 %v297_v1  ;;  %565 = vmatpush.msra.mxu3 %v297_v1 }
 0x1f5   :  { %442 = vmatpush.msra.mxu0 %v398_v8  ;;  %566 = vmatpush.msra.mxu1 %v398_v8 }
 0x1f6   :  { %554 = vmatmul.msk.f32.vlgmr.msra.gmra.mxu2 %vm165_vm1, %v726_v35  ;;  %555 = vmatmul.msk.f32.vlgmr.msra.gmra.mxu3 %vm165_vm1, %v734_v37  ;;  %v343_v35 = vpop.f32.mrf.mxu1 }
 0x1f7   :  { %443 = vmatpush.msra.mxu0 %v395_v6  ;;  %567 = vmatpush.msra.mxu1 %v395_v6 }
 0x1f9   :  { %444 = vmatpush.msra.mxu0 %v392_v4  ;;  %568 = vmatpush.msra.mxu1 %v392_v4 }
 0x1fb   :  { %445 = vmatpush.msra.mxu0 %v389_v2  ;;  %569 = vmatpush.msra.mxu1 %v389_v2 }
 0x1fc   :  { %558 = vmatmul.msk.f32.vlgmr.msra.gmra.mxu0 %vm165_vm1, %v755_v40  ;;  %560 = vmatmul.msk.f32.vlgmr.msra.gmra.mxu1 %vm165_vm1, %v769_v42 }
 0x1fe   :  { %556 = vmatmul.msk.f32.gmra.mxu3 %vm165_vm1, %v741_v38  ;;  %v346_v37 = vpop.f32.mrf.mxu1  ;;  %v571_v38 = vld [vmem:[%s965_s4] ss:$0 sm:$0xff] }
 0x204   :  { %559 = vmatmul.msk.f32.gmra.mxu0 %vm165_vm1, %v762_v41  ;;  %561 = vmatmul.msk.f32.gmra.mxu1 %vm165_vm1, %v776_v43 }
 0x206   :  { %557 = vmatmul.msk.f32.gmra.mxu3 %vm165_vm1, %v748_v39  ;;  %v349_v9 = vpop.f32.mrf.mxu1 }
 0x20e   :  { %v352_v10 = vpop.f32.mrf.mxu1 }
 0x279   :  { %v418_v40 = vpop.f32.mrf.mxu2  ;;  %v421_v11 = vpop.f32.mrf.mxu3 }
 0x27a   :  { %v419_v12 = vadd.f32 %v418_v40, %v343_v35  ;;  %v447_v42 = vpop.f32.mrf.mxu0  ;;  %v453_v14 = vpop.f32.mrf.mxu1  ;;  %v422_v43 = vadd.f32 %v421_v11, %v346_v37 }
 0x27c   :  { %v459_v13 = vadd.f32 %v447_v42, %v419_v12 }
 0x27e   :  { %v466_v41 = vadd.f32 %v571_v38, %v459_v13 }
 0x280   :  { %v470_v15 = vmax.f32 %v466_v41, 0.0 }
 0x281   :  { %v424_v16 = vpop.f32.mrf.mxu3 }
 0x282   :  { %474 = vst [vmem:[%s960_s7] sm:$0xff] %v470_v15  ;;  %v425_v39 = vadd.f32 %v424_v16, %v349_v9  ;;  %v450_v17 = vpop.f32.mrf.mxu0  ;;  %v456_v25 = vpop.f32.mrf.mxu1 }
 0x283   :  { %v460_v18 = vadd.f32 %v450_v17, %v422_v43 }
 0x284   :  { %v461_v19 = vadd.f32 %v453_v14, %v425_v39 }
 0x285   :  { %v467_v20 = vadd.f32 %v571_v38, %v460_v18 }
 0x286   :  { %v468_v21 = vadd.f32 %v571_v38, %v461_v19 }
 0x287   :  { %v471_v22 = vmax.f32 %v467_v20, 0.0 }
 0x288   :  { %v472_v23 = vmax.f32 %v468_v21, 0.0 }
 0x289   :  { %475 = vst [vmem:[%s960_s7 + $0x10] sm:$0xff] %v471_v22  ;;  %v427_v24 = vpop.f32.mrf.mxu3 }
 0x28a   :  { %476 = vst [vmem:[%s960_s7 + $0x20] sm:$0xff] %v472_v23  ;;  %v428_v26 = vadd.f32 %v427_v24, %v352_v10 }
 0x28c   :  { %v462_v27 = vadd.f32 %v456_v25, %v428_v26 }
 0x28e   :  { %v469_v28 = vadd.f32 %v571_v38, %v462_v27 }
 0x290   :  { %v473_v29 = vmax.f32 %v469_v28, 0.0 }
 0x292   :  { %477 = vst [vmem:[%s960_s7 + $0x30] sm:$0xff] %v473_v29 }

</bundles_post_ra>
